<compile_context>
chip_gen: v7x
topology: tpu7x:2x2x1
jax: 0.10.0
libtpu: 0.0.40
codegen_flags: <defaults>
</compile_context>

<pallas_src>
import functools
import math

import jax
import jax.numpy as jnp
from jax.experimental import pallas as pl
from jax.experimental.pallas import tpu as pltpu

_INV_SQRT2 = 1.0 / math.sqrt(2.0)
_LN_EPS = 1e-5
_PREC = jax.lax.Precision.HIGHEST     # only for the tiny [1,D] adaptive-weighting MLP
_AR_K = 3
_MA_K = 5


# ----------------------------------------------------------------------------- helpers
def _gelu(v):
    # exact (erf-based) GELU, matching nn.GELU() default
    return 0.5 * v * (1.0 + jax.lax.erf(v * _INV_SQRT2))


def _layernorm(v, g, b):
    mu = jnp.mean(v, axis=-1, keepdims=True)
    vc = v - mu
    var = jnp.mean(vc * vc, axis=-1, keepdims=True)
    return vc * jax.lax.rsqrt(var + _LN_EPS) * g + b


def _pick_seq_tile(S, max_tile=512):
    """Largest tile <= max_tile that divides S, preferring multiples of 8 (sublane)."""
    if S <= max_tile:
        return S
    start = max_tile - (max_tile % 8)
    for ts in range(start, 7, -8):
        if S % ts == 0:
            return ts
    for ts in range(max_tile, 0, -1):
        if S % ts == 0:
            return ts
    return S


def _expand_grouped_conv(w, groups):
    """PyTorch Conv1d weight [out_ch, in_per_group, K] -> dense per-tap [K, in_ch, out_ch]."""
    out_ch, in_pg, K = w.shape
    out_pg = out_ch // groups
    in_ch = in_pg * groups
    dense = jnp.zeros((K, in_ch, out_ch), w.dtype)
    for g in range(groups):
        blk = jnp.transpose(w[g * out_pg:(g + 1) * out_pg], (2, 1, 0))  # [K, in_pg, out_pg]
        dense = dense.at[:, g * in_pg:(g + 1) * in_pg, g * out_pg:(g + 1) * out_pg].set(blk)
    return dense


# --------------------------------------------------- Kernel A: adaptive weighting (tiled mean)
def _adaptive_weighting_ln(x, ln_g, ln_b, w1, b1, w2, b2, *, seq_tile=None):
    """weights = Softmax(MLP(mean_seq(LayerNorm(x)))) -> [B, 1, 2], sequence-tiled accumulator."""
    B, S, D = x.shape
    Dh = w1.shape[1]
    ts = seq_tile or _pick_seq_tile(S)
    assert S % ts == 0, "sequence length must be divisible by the sequence tile"
    n_s = S // ts
    inv_S = 1.0 / S

    def kernel(x_ref, g_ref, be_ref, w1_ref, b1_ref, w2_ref, b2_ref, out_ref, acc_ref):
        # NOTE: the accumulator relies on the sequence (reduction) axis being the innermost
        # ("arbitrary") grid axis: zeroed at s==0, finalized at the last sequence step.
        s = pl.program_id(1)

        @pl.when(s == 0)
        def _():
            acc_ref[...] = jnp.zeros_like(acc_ref)

        xt = x_ref[0]                                        # [ts, D]
        xn = _layernorm(xt, g_ref[...], be_ref[...])
        acc_ref[...] += jnp.sum(xn, axis=0, keepdims=True)   # running sum over the sequence

        @pl.when(s == pl.num_programs(1) - 1)
        def _():
            gc = acc_ref[...] * inv_S                        # [1, D] global context (mean)
            # tiny [1,D] MLP: FLOPs negligible, keep HIGHEST so the softmax weights stay exact
            h = jnp.dot(gc, w1_ref[...], preferred_element_type=jnp.float32,
                        precision=_PREC) + b1_ref[...]
            h = _gelu(h)
            logits = jnp.dot(h, w2_ref[...], preferred_element_type=jnp.float32,
                             precision=_PREC) + b2_ref[...]
            m = jnp.max(logits, axis=-1, keepdims=True)
            e = jnp.exp(logits - m)
            out_ref[0] = (e / jnp.sum(e, axis=-1, keepdims=True)).astype(out_ref.dtype)

    const2 = lambda b, s: (0, 0)
    vmem_limit = int(min(max(4 * ts * D * 4 + 2 * (D * Dh + D) * 4 + (16 << 20), 32 << 20),
                         100 << 20))
    cost = pl.CostEstimate(
        flops=int(8 * B * S * D + 2 * B * (D * Dh + 2 * Dh)),
        transcendentals=int(B * (Dh + 4)),
        bytes_accessed=int(x.size * x.dtype.itemsize + B * 8 + (D * Dh + D) * 4))

    return pl.pallas_call(
        kernel,
        out_shape=jax.ShapeDtypeStruct((B, 1, 2), jnp.float32),
        grid_spec=pltpu.PrefetchScalarGridSpec(
            num_scalar_prefetch=0,
            grid=(B, n_s),                                   # reduction (seq) axis last
            in_specs=[
                pl.BlockSpec((1, ts, D), lambda b, s: (b, s, 0)),
                pl.BlockSpec((1, D), const2),                # resident weights, DMA'd once
                pl.BlockSpec((1, D), const2),
                pl.BlockSpec((D, Dh), const2),
                pl.BlockSpec((1, Dh), const2),
                pl.BlockSpec((Dh, 2), const2),
                pl.BlockSpec((1, 2), const2),
            ],
            out_specs=pl.BlockSpec((1, 1, 2), lambda b, s: (b, 0, 0)),
            scratch_shapes=[pltpu.VMEM((1, D), jnp.float32)],
        ),
        compiler_params=pltpu.CompilerParams(
            dimension_semantics=("parallel", "arbitrary"),
            vmem_limit_bytes=vmem_limit),
        cost_estimate=cost,
    )(x, ln_g, ln_b, w1, b1, w2, b2)


# --------------------------------------------------- Kernel B: AR/MA branches + combine + proj
def _arma_main_kernel(x_hbm, wada_ref, ln_g_ref, ln_b_ref,
                      w_ar_ref, b_ar_ref,
                      w_are_ref, b_are_ref, g_are_ref, be_are_ref,
                      w_mg1_ref, b_mg1_ref, w_mg2_ref, b_mg2_ref,
                      w_mae_ref, b_mae_ref, g_mae_ref, be_mae_ref,
                      w_out_ref, b_out_ref,
                      o_ref,
                      xw_ref, dma_sem,
                      *, ts, halo_l, halo_r, dil, ar_k, ma_k, grouped, seq_len, d_model):
    b = pl.program_id(0)
    t = pl.program_id(1)
    D = d_model
    Wn = halo_l + ts + halo_r

    # ---- manual DMA of the halo'd window of (zero-padded) x for this sequence tile ----
    row0 = t * ts
    if ts % 8 == 0:
        row0 = pl.multiple_of(row0, 8)
    cp = pltpu.make_async_copy(x_hbm.at[b, pl.ds(row0, Wn), :], xw_ref, dma_sem.at[0])
    cp.start()
    cp.wait()

    xw = xw_ref[...]                                             # [Wn, D] raw x (f32)
    xn_w = _layernorm(xw, ln_g_ref[...], ln_b_ref[...])
    # Conv / unfold zero-padding happens AFTER the LayerNorm in the reference module, so halo
    # rows falling outside [0, seq_len) must be exactly zero.
    orig = (t * ts - halo_l) + jax.lax.broadcasted_iota(jnp.int32, (Wn, 1), 0)
    xn_w = jnp.where((orig >= 0) & (orig < seq_len), xn_w, 0.0)
    xn_w16 = xn_w.astype(jnp.bfloat16)                           # bf16 MXU operands, f32 acc

    x_tile = xw[halo_l:halo_l + ts]                              # residual rows (always valid)
    xn_t16 = xn_w16[halo_l:halo_l + ts]

    # ---- AR branch: gated causal dilated grouped conv as ar_k shifted matmuls ----
    # Static window slices replace the old concatenate-based shifts (halo makes them in-bounds).
    if grouped:
        _, G, ipg, out2 = w_ar_ref.shape                         # out2 = 2 * head_dim
        parts = []
        for g in range(G):
            acc = jnp.zeros((ts, out2), jnp.float32)
            for k in range(ar_k):
                off = halo_l - (ar_k - 1 - k) * dil              # causal: x[t - (K-1-k)*dil]
                xs = xn_w16[off:off + ts, g * ipg:(g + 1) * ipg]
                acc = acc + jnp.dot(xs, w_ar_ref[k, g], preferred_element_type=jnp.float32)
            parts.append(acc)
        conv = jnp.concatenate(parts, axis=1)                    # [ts, 2D], conv channel order
    else:
        conv = jnp.zeros((ts, 2 * D), jnp.float32)
        for k in range(ar_k):
            off = halo_l - (ar_k - 1 - k) * dil
            conv = conv + jnp.dot(xn_w16[off:off + ts], w_ar_ref[k],
                                  preferred_element_type=jnp.float32)
    conv = conv + b_ar_ref[...]
    ar = jax.nn.sigmoid(conv[:, :D]) * conv[:, D:]               # gate/value = chunk(2, dim=1)
    ar = jnp.dot(ar.astype(jnp.bfloat16), w_are_ref[...],
                 preferred_element_type=jnp.float32) + b_are_ref[...]
    ar = _gelu(_layernorm(ar, g_are_ref[...], be_are_ref[...]))

    # ---- MA branch: dynamic depthwise conv; single wide matmul generates all ma_k taps ----
    h = _gelu(jnp.dot(xn_t16, w_mg1_ref[...],
                      preferred_element_type=jnp.float32) + b_mg1_ref[...])
    dyn = jnp.dot(h.astype(jnp.bfloat16), w_mg2_ref[...],
                  preferred_element_type=jnp.float32) + b_mg2_ref[...]     # [ts, ma_k*D]
    ma = jnp.zeros((ts, D), jnp.float32)
    for k in range(ma_k):
        off = halo_l + k - (ma_k // 2)                           # x[l + k - K//2]
        ma = ma + dyn[:, k * D:(k + 1) * D] * xn_w[off:off + ts]
    ma = jnp.dot(ma.astype(jnp.bfloat16), w_mae_ref[...],
                 preferred_element_type=jnp.float32) + b_mae_ref[...]
    ma = _gelu(_layernorm(ma, g_mae_ref[...], be_mae_ref[...]))

    # ---- adaptive combine: per-batch scalars from SMEM (attention_scale pre-folded) ----
    w0 = wada_ref[b, 0]
    w1 = wada_ref[b, 1]
    # TODO(synk): attention_dropout is identity in inference mode; training dropout not implemented.
    out = w0 * ar + w1 * ma
    out = jnp.dot(out.astype(jnp.bfloat16), w_out_ref[...],
                  preferred_element_type=jnp.float32) + b_out_ref[...]
    o_ref[0] = (out + x_tile).astype(o_ref.dtype)                # residual uses pre-LN x


def arma_attention(x, params, *, n_heads=8, layer_depth=0, seq_tile=None, aw_seq_tile=None):
    """Full ARMAAttention forward (inference; mask=None). x: [B, S, D] -> [B, S, D]."""
    B, S, D = x.shape
    dil = 2 ** layer_depth
    head_dim = D // n_heads

    # 1) adaptive weights alpha(x_ln); fold attention_scale into the tiny per-batch weights.
    w_ada = _adaptive_weighting_ln(
        x, params["ln_g"], params["ln_b"],
        params["aw_w1"], params["aw_b1"], params["aw_w2"], params["aw_b2"],
        seq_tile=aw_seq_tile)
    w_ada = (w_ada * params["attention_scale"]).reshape(B, 2)

    # 2) sequence tiling with halos; x zero-padded so the window DMA never goes OOB.
    ts = seq_tile or _pick_seq_tile(S)
    assert S % ts == 0, "sequence length must be divisible by the sequence tile"
    n_t = S // ts
    halo_l = max((_AR_K - 1) * dil, _MA_K // 2)
    halo_r = _MA_K // 2
    Wn = halo_l + ts + halo_r
    x_pad = jnp.pad(x, ((0, 0), (halo_l, halo_r), (0, 0)))

    bf16 = jnp.bfloat16
    # 3) AR conv weights: keep block-diagonal (per-group) structure when MXU-friendly,
    #    otherwise densify to per-tap [K, D, 2D] (conv channel order).
    grouped = head_dim >= 128
    if grouped:
        w_ar = (params["ar_conv_w"]
                .reshape(n_heads, 2 * head_dim, head_dim, _AR_K)
                .transpose(3, 0, 2, 1).astype(bf16))             # [K, G, in_pg, 2*head_dim]
        w_ar_spec = pl.BlockSpec((_AR_K, n_heads, head_dim, 2 * head_dim),
                                 lambda b, t: (0, 0, 0, 0))
    else:
        w_ar = _expand_grouped_conv(params["ar_conv_w"], n_heads).astype(bf16)  # [K, D, 2D]
        w_ar_spec = pl.BlockSpec((_AR_K, D, 2 * D), lambda b, t: (0, 0, 0))
    b_ar = params["ar_conv_b"][None, :]                          # [1, 2D] f32

    w_are = params["ar_e_w"].astype(bf16)
    w_mg1 = params["ma_g_w1"].astype(bf16)
    w_mg2 = params["ma_g_w2"].astype(bf16)                       # [D, MA_K*D] single wide matmul
    b_mg2 = params["ma_g_b2"][None, :]
    w_mae = params["ma_e_w"].astype(bf16)
    w_out = params["out_w"].astype(bf16)

    kernel = functools.partial(
        _arma_main_kernel, ts=ts, halo_l=halo_l, halo_r=halo_r, dil=dil,
        ar_k=_AR_K, ma_k=_MA_K, grouped=grouped, seq_len=S, d_model=D)

    c2 = lambda b, t: (0, 0)
    weight_args = [w_ar, b_ar, w_are, params["ar_e_b"], params["ar_e_g"], params["ar_e_be"],
                   w_mg1, params["ma_g_b1"], w_mg2, b_mg2,
                   w_mae, params["ma_e_b"], params["ma_e_g"], params["ma_e_be"],
                   w_out, params["out_b"]]
    weight_bytes = sum(int(w.size) * w.dtype.itemsize for w in weight_args)
    block_bytes = Wn * D * 4 + 2 * ts * D * x.dtype.itemsize
    # NOTE: constant-index weights are DMA'd once but still double-buffered by the pipeliner;
    # TODO(synk): single-buffer them (pl.Buffered(1) / pl.ANY staging) for very large d_model.
    vmem_limit = int(min(max(2 * weight_bytes + 2 * block_bytes + (16 << 20), 32 << 20),
                         100 << 20))
    conv_cols = 2 * head_dim if grouped else 2 * D
    flops = 2 * B * S * D * (_AR_K * conv_cols + 4 * D + _MA_K * D) + 12 * B * S * D
    cost = pl.CostEstimate(
        flops=int(flops),
        transcendentals=int(5 * B * S * D),
        bytes_accessed=int(x_pad.size * x_pad.dtype.itemsize
                           + x.size * x.dtype.itemsize + weight_bytes))

    out = pl.pallas_call(
        kernel,
        out_shape=jax.ShapeDtypeStruct((B, S, D), x.dtype),
        grid_spec=pltpu.PrefetchScalarGridSpec(
            num_scalar_prefetch=0,
            grid=(B, n_t),
            in_specs=[
                pl.BlockSpec(memory_space=pl.ANY),                     # x_pad: manual halo DMA
                pl.BlockSpec(memory_space=pltpu.MemorySpace.SMEM),     # combine scalars [B,2]
                pl.BlockSpec((1, D), c2), pl.BlockSpec((1, D), c2),            # layer_norm g,b
                w_ar_spec, pl.BlockSpec((1, 2 * D), c2),                       # ar conv w,b
                pl.BlockSpec((D, D), c2), pl.BlockSpec((1, D), c2),            # ar_enh linear
                pl.BlockSpec((1, D), c2), pl.BlockSpec((1, D), c2),            # ar_enh LN
                pl.BlockSpec((D, D), c2), pl.BlockSpec((1, D), c2),            # ma_gen linear1
                pl.BlockSpec((D, _MA_K * D), c2), pl.BlockSpec((1, _MA_K * D), c2),  # ma_gen lin2
                pl.BlockSpec((D, D), c2), pl.BlockSpec((1, D), c2),            # ma_enh linear
                pl.BlockSpec((1, D), c2), pl.BlockSpec((1, D), c2),            # ma_enh LN
                pl.BlockSpec((D, D), c2), pl.BlockSpec((1, D), c2),            # output proj
            ],
            out_specs=pl.BlockSpec((1, ts, D), lambda b, t: (b, t, 0)),
            scratch_shapes=[pltpu.VMEM((Wn, D), jnp.float32),
                            pltpu.SemaphoreType.DMA((1,))],
        ),
        compiler_params=pltpu.CompilerParams(
            dimension_semantics=("parallel", "parallel"),      # batch + seq tiles (v7x megacore)
            vmem_limit_bytes=vmem_limit),
        cost_estimate=cost,
    )(x_pad, w_ada,
      params["ln_g"], params["ln_b"],
      w_ar, b_ar,
      w_are, params["ar_e_b"], params["ar_e_g"], params["ar_e_be"],
      w_mg1, params["ma_g_b1"], w_mg2, b_mg2,
      w_mae, params["ma_e_b"], params["ma_e_g"], params["ma_e_be"],
      w_out, params["out_b"])
    return out


# ----------------------------------------------------------------------------- reference
def _reference_forward(x, p, *, n_heads, layer_depth):
    """Pure-JAX replica of ARMAAttention.forward (eval mode, mask=None).

    Big matmuls use bf16 operands with f32 accumulation to mirror the kernel's MXU config.
    """
    B, S, D = x.shape
    dil = 2 ** layer_depth
    ARK, MAK = _AR_K, _MA_K
    bf = lambda a: a.astype(jnp.bfloat16)

    def ln(v, g, b):
        mu = v.mean(-1, keepdims=True)
        var = ((v - mu) ** 2).mean(-1, keepdims=True)
        return (v - mu) / jnp.sqrt(var + _LN_EPS) * g + b

    def mm(a, w):
        return jnp.einsum('...d,do->...o', bf(a), bf(w), preferred_element_type=jnp.float32)

    xn = ln(x, p["ln_g"], p["ln_b"])

    # AR branch: grouped causal dilated conv via lax.conv (independent path vs. the kernel).
    xt = jnp.transpose(xn, (0, 2, 1))
    pad = (ARK - 1) * dil
    xp = jnp.pad(xt, ((0, 0), (0, 0), (pad, 0)))
    conv = jax.lax.conv_general_dilated(
        bf(xp), bf(p["ar_conv_w"]), window_strides=(1,), padding="VALID",
        rhs_dilation=(dil,), dimension_numbers=("NCH", "OIH", "NCH"),
        feature_group_count=n_heads, preferred_element_type=jnp.float32)
    conv = conv + p["ar_conv_b"][None, :, None]
    gates, values = conv[:, :D, :], conv[:, D:, :]
    ar = jax.nn.sigmoid(gates) * values
    ar = jnp.transpose(ar[:, :, :S], (0, 2, 1))
    ar = _gelu(ln(mm(ar, p["ar_e_w"]) + p["ar_e_b"], p["ar_e_g"], p["ar_e_be"]))

    # MA branch: dynamic depthwise conv (unfold == shifted windows).
    h = _gelu(mm(xn, p["ma_g_w1"]) + p["ma_g_b1"])
    dyn = (mm(h, p["ma_g_w2"]) + p["ma_g_b2"]).reshape(B, S, MAK, D)
    xpad = jnp.pad(xn, ((0, 0), (MAK // 2, MAK // 2), (0, 0)))
    ma = jnp.zeros_like(xn)
    for k in range(MAK):
        ma = ma + dyn[:, :, k, :] * xpad[:, k:k + S, :]
    ma = _gelu(ln(mm(ma, p["ma_e_w"]) + p["ma_e_b"], p["ma_e_g"], p["ma_e_be"]))

    # adaptive weighting (f32 HIGHEST, matching Kernel A's tiny MLP)
    gc = xn.mean(axis=1, keepdims=True)
    hh = _gelu(jnp.einsum('bsd,dh->bsh', gc, p["aw_w1"], precision=_PREC) + p["aw_b1"])
    logits = jnp.einsum('bsh,ho->bso', hh, p["aw_w2"], precision=_PREC) + p["aw_b2"]
    w = jax.nn.softmax(logits, axis=-1)                          # [B,1,2]

    out = w[..., 0:1] * ar + w[..., 1:2] * ma
    out = out * p["attention_scale"]
    out = mm(out, p["out_w"]) + p["out_b"]
    return out + x


# ----------------------------------------------------------------------------- params
def init_params(key, d_model, n_heads, ar_k=_AR_K, ma_k=_MA_K):
    D, Dh = d_model, d_model // 4
    in_pg = D // n_heads
    keys = jax.random.split(key, 16)
    ki = iter(keys)

    def u(k, fan_in, shape):
        b = 1.0 / math.sqrt(fan_in)
        return jax.random.uniform(k, shape, jnp.float32, -b, b)

    return dict(
        ln_g=jnp.ones((1, D), jnp.float32), ln_b=jnp.zeros((1, D), jnp.float32),
        ar_conv_w=u(next(ki), in_pg * ar_k, (2 * D, in_pg, ar_k)),
        ar_conv_b=u(next(ki), in_pg * ar_k, (2 * D,)),
        ar_e_w=u(next(ki), D, (D, D)), ar_e_b=u(next(ki), D, (1, D)),
        ar_e_g=jnp.ones((1, D), jnp.float32), ar_e_be=jnp.zeros((1, D), jnp.float32),
        ma_g_w1=u(next(ki), D, (D, D)), ma_g_b1=u(next(ki), D, (1, D)),
        ma_g_w2=u(next(ki), D, (D, ma_k * D)), ma_g_b2=u(next(ki), D, (ma_k * D,)),
        ma_e_w=u(next(ki), D, (D, D)), ma_e_b=u(next(ki), D, (1, D)),
        ma_e_g=jnp.ones((1, D), jnp.float32), ma_e_be=jnp.zeros((1, D), jnp.float32),
        aw_w1=u(next(ki), D, (D, Dh)), aw_b1=u(next(ki), D, (1, Dh)),
        aw_w2=u(next(ki), Dh, (Dh, 2)), aw_b2=u(next(ki), Dh, (1, 2)),
        out_w=u(next(ki), D, (D, D)), out_b=u(next(ki), D, (1, D)),
        attention_scale=jnp.float32(1.0),
    )


if __name__ == "__main__":
    configs = [
        # (B, S, D, n_heads, layer_depth, seq_tile)
        (2, 16, 32, 8, 0, 8),      # dense AR-conv path (head_dim=4), 2 seq tiles
        (1, 16, 256, 2, 1, 8),     # grouped AR-conv path (head_dim=128), dilation=2 halo
    ]
    key = jax.random.PRNGKey(0)
    for (B, S, D, H, depth, ts) in configs:
        key, kp, kx = jax.random.split(key, 3)
        params = init_params(kp, D, H)
        x = jax.random.normal(kx, (B, S, D), dtype=jnp.float32)

        out = jax.block_until_ready(
            arma_attention(x, params, n_heads=H, layer_depth=depth, seq_tile=ts))
        ref = jax.block_until_ready(
            _reference_forward(x, params, n_heads=H, layer_depth=depth))

        assert out.shape == (B, S, D), out.shape
        err = float(jnp.max(jnp.abs(out - ref)))
        assert err < 1e-2, f"max abs err {err} (B={B}, S={S}, D={D}, H={H})"
    print("KERNEL_OK")
</pallas_src>

<mosaic_0001>
module attributes {stable_mosaic.version = 11 : i64} {
  func.func @kernel(%arg0: i32, %arg1: i32, %arg2: memref<1x16x32xf32, #tpu.memory_space<vmem>>, %arg3: memref<1x32xf32, #tpu.memory_space<vmem>>, %arg4: memref<1x32xf32, #tpu.memory_space<vmem>>, %arg5: memref<32x8xf32, #tpu.memory_space<vmem>>, %arg6: memref<1x8xf32, #tpu.memory_space<vmem>>, %arg7: memref<8x2xf32, #tpu.memory_space<vmem>>, %arg8: memref<1x2xf32, #tpu.memory_space<vmem>>, %arg9: memref<1x1x2xf32, #tpu.memory_space<vmem>>, %arg10: memref<1x32xf32, #tpu.memory_space<vmem>>) attributes {dimension_semantics = [#tpu.dimension_semantics<parallel>, #tpu.dimension_semantics<arbitrary>], iteration_bounds = array<i64: 2, 1>, scalar_prefetch = 0 : i64, scratch_operands = 1 : i64, tpu.core_type = #tpu.core_type<tc>, window_params = [{transform_indices = @transform_0, window_bounds = array<i64: 1, 16, 32>}, {pipeline_mode = #tpu.pipeline_mode<synchronous>, transform_indices = @transform_1, window_bounds = array<i64: 1, 32>}, {pipeline_mode = #tpu.pipeline_mode<synchronous>, transform_indices = @transform_2, window_bounds = array<i64: 1, 32>}, {pipeline_mode = #tpu.pipeline_mode<synchronous>, transform_indices = @transform_3, window_bounds = array<i64: 32, 8>}, {pipeline_mode = #tpu.pipeline_mode<synchronous>, transform_indices = @transform_4, window_bounds = array<i64: 1, 8>}, {pipeline_mode = #tpu.pipeline_mode<synchronous>, transform_indices = @transform_5, window_bounds = array<i64: 8, 2>}, {pipeline_mode = #tpu.pipeline_mode<synchronous>, transform_indices = @transform_6, window_bounds = array<i64: 1, 2>}, {transform_indices = @transform_7, window_bounds = array<i64: 1, 1, 2>}]} {
    %c0_i32 = arith.constant 0 : i32
    %0 = arith.cmpi eq, %arg1, %c0_i32 : i32
    %1 = arith.extui %0 : i1 to i32
    %c0_i32_0 = arith.constant 0 : i32
    %2 = arith.cmpi ne, %1, %c0_i32_0 : i32
    scf.if %2 {
      %cst_18 = arith.constant 0.000000e+00 : f32
      %35 = vector.broadcast %cst_18 : f32 to vector<1x32xf32>
      %c0_19 = arith.constant 0 : index
      %c0_20 = arith.constant 0 : index
      %36 = vector.load %arg10[%c0_19, %c0_20] : memref<1x32xf32, #tpu.memory_space<vmem>>, vector<1x32xf32>
      tpu.vector_store %arg10[%c0_19, %c0_20], %35 {strides = array<i32>} : memref<1x32xf32, #tpu.memory_space<vmem>>, vector<1x32xf32>,
    } else {
    }
    %c0 = arith.constant 0 : index
    %c0_1 = arith.constant 0 : index
    %c0_2 = arith.constant 0 : index
    %3 = vector.load %arg2[%c0, %c0_1, %c0_2] : memref<1x16x32xf32, #tpu.memory_space<vmem>>, vector<1x16x32xf32>
    %4 = vector.shape_cast %3 : vector<1x16x32xf32> to vector<16x32xf32>
    %c0_3 = arith.constant 0 : index
    %c0_4 = arith.constant 0 : index
    %5 = vector.load %arg3[%c0_3, %c0_4] : memref<1x32xf32, #tpu.memory_space<vmem>>, vector<1x32xf32>
    %c0_5 = arith.constant 0 : index
    %c0_6 = arith.constant 0 : index
    %6 = vector.load %arg4[%c0_5, %c0_6] : memref<1x32xf32, #tpu.memory_space<vmem>>, vector<1x32xf32>
    %cst = arith.constant dense<0.000000e+00> : vector<16xf32>
    %7 = vector.multi_reduction <add>, %4, %cst [1] : vector<16x32xf32> to vector<16xf32>
    %8 = vector.shape_cast %7 : vector<16xf32> to vector<16x1xf32>
    %cst_7 = arith.constant 3.200000e+01 : f32
    %9 = vector.broadcast %cst_7 : f32 to vector<16x1xf32>
    %10 = arith.divf %8, %9 : vector<16x1xf32>
    %11 = vector.broadcast %10 : vector<16x1xf32> to vector<16x32xf32>
    %12 = arith.subf %4, %11 : vector<16x32xf32>
    %13 = arith.mulf %12, %12 : vector<16x32xf32>
    %cst_8 = arith.constant dense<0.000000e+00> : vector<16xf32>
    %14 = vector.multi_reduction <add>, %13, %cst_8 [1] : vector<16x32xf32> to vector<16xf32>
    %15 = vector.shape_cast %14 : vector<16xf32> to vector<16x1xf32>
    %cst_9 = arith.constant 3.200000e+01 : f32
    %16 = vector.broadcast %cst_9 : f32 to vector<16x1xf32>
    %17 = arith.divf %15, %16 : vector<16x1xf32>
    %cst_10 = arith.constant 9.99999974E-6 : f32
    %18 = vector.broadcast %cst_10 : f32 to vector<16x1xf32>
    %19 = arith.addf %17, %18 : vector<16x1xf32>
    %20 = math.rsqrt %19 : vector<16x1xf32>
    %21 = vector.broadcast %20 : vector<16x1xf32> to vector<16x32xf32>
    %22 = arith.mulf %12, %21 : vector<16x32xf32>
    %23 = vector.broadcast %5 : vector<1x32xf32> to vector<16x32xf32>
    %24 = arith.mulf %22, %23 : vector<16x32xf32>
    %25 = vector.broadcast %6 : vector<1x32xf32> to vector<16x32xf32>
    %26 = arith.addf %24, %25 : vector<16x32xf32>
    %c0_11 = arith.constant 0 : index
    %c0_12 = arith.constant 0 : index
    %27 = vector.load %arg10[%c0_11, %c0_12] : memref<1x32xf32, #tpu.memory_space<vmem>>, vector<1x32xf32>
    %cst_13 = arith.constant dense<0.000000e+00> : vector<32xf32>
    %28 = vector.multi_reduction <add>, %26, %cst_13 [0] : vector<16x32xf32> to vector<32xf32>
    %29 = vector.shape_cast %28 : vector<32xf32> to vector<1x32xf32>
    %30 = arith.addf %27, %29 : vector<1x32xf32>
    %c0_14 = arith.constant 0 : index
    %c0_15 = arith.constant 0 : index
    %31 = vector.load %arg10[%c0_14, %c0_15] : memref<1x32xf32, #tpu.memory_space<vmem>>, vector<1x32xf32>
    tpu.vector_store %arg10[%c0_14, %c0_15], %30 {strides = array<i32>} : memref<1x32xf32, #tpu.memory_space<vmem>>, vector<1x32xf32>,
    %c0_i32_16 = arith.constant 0 : i32
    %32 = arith.cmpi eq, %arg1, %c0_i32_16 : i32
    %33 = arith.extui %32 : i1 to i32
    %c0_i32_17 = arith.constant 0 : i32
    %34 = arith.cmpi ne, %33, %c0_i32_17 : i32
    scf.if %34 {
      %c0_18 = arith.constant 0 : index
      %c0_19 = arith.constant 0 : index
      %35 = vector.load %arg10[%c0_18, %c0_19] : memref<1x32xf32, #tpu.memory_space<vmem>>, vector<1x32xf32>
      %cst_20 = arith.constant 6.250000e-02 : f32
      %36 = vector.broadcast %cst_20 : f32 to vector<1x32xf32>
      %37 = arith.mulf %35, %36 : vector<1x32xf32>
      %c0_21 = arith.constant 0 : index
      %c0_22 = arith.constant 0 : index
      %38 = vector.load %arg5[%c0_21, %c0_22] : memref<32x8xf32, #tpu.memory_space<vmem>>, vector<32x8xf32>
      %cst_23 = arith.constant dense<0.000000e+00> : vector<1x8xf32>
      %39 = tpu.matmul %37, %38, %cst_23 {dimension_numbers = #tpu.dot_dimension_numbers<[1], [0], [0], [1], [0, 0, 1, 1], [], []>, precision = #tpu.contract_precision<fp32>} : vector<1x32xf32>, vector<32x8xf32>, vector<1x8xf32> -> vector<1x8xf32>
      %c0_24 = arith.constant 0 : index
      %c0_25 = arith.constant 0 : index
      %40 = vector.load %arg6[%c0_24, %c0_25] : memref<1x8xf32, #tpu.memory_space<vmem>>, vector<1x8xf32>
      %41 = arith.addf %39, %40 : vector<1x8xf32>
      %cst_26 = arith.constant 5.000000e-01 : f32
      %42 = vector.broadcast %cst_26 : f32 to vector<1x8xf32>
      %43 = arith.mulf %42, %41 : vector<1x8xf32>
      %cst_27 = arith.constant 0.707106769 : f32
      %44 = vector.broadcast %cst_27 : f32 to vector<1x8xf32>
      %45 = arith.mulf %41, %44 : vector<1x8xf32>
      %46 = math.erf %45 : vector<1x8xf32>
      %cst_28 = arith.constant 1.000000e+00 : f32
      %47 = vector.broadcast %cst_28 : f32 to vector<1x8xf32>
      %48 = arith.addf %47, %46 : vector<1x8xf32>
      %49 = arith.mulf %43, %48 : vector<1x8xf32>
      %c0_29 = arith.constant 0 : index
      %c0_30 = arith.constant 0 : index
      %50 = vector.load %arg7[%c0_29, %c0_30] : memref<8x2xf32, #tpu.memory_space<vmem>>, vector<8x2xf32>
      %cst_31 = arith.constant dense<0.000000e+00> : vector<1x2xf32>
      %51 = tpu.matmul %49, %50, %cst_31 {dimension_numbers = #tpu.dot_dimension_numbers<[1], [0], [0], [1], [0, 0, 1, 1], [], []>, precision = #tpu.contract_precision<fp32>} : vector<1x8xf32>, vector<8x2xf32>, vector<1x2xf32> -> vector<1x2xf32>
      %c0_32 = arith.constant 0 : index
      %c0_33 = arith.constant 0 : index
      %52 = vector.load %arg8[%c0_32, %c0_33] : memref<1x2xf32, #tpu.memory_space<vmem>>, vector<1x2xf32>
      %53 = arith.addf %51, %52 : vector<1x2xf32>
      %cst_34 = arith.constant dense<0xFF800000> : vector<1xf32>
      %54 = vector.multi_reduction <maximumf>, %53, %cst_34 [1] : vector<1x2xf32> to vector<1xf32>
      %55 = vector.shape_cast %54 : vector<1xf32> to vector<1x1xf32>
      %56 = vector.broadcast %55 : vector<1x1xf32> to vector<1x2xf32>
      %57 = arith.subf %53, %56 : vector<1x2xf32>
      %58 = math.exp %57 : vector<1x2xf32>
      %cst_35 = arith.constant dense<0.000000e+00> : vector<1xf32>
      %59 = vector.multi_reduction <add>, %58, %cst_35 [1] : vector<1x2xf32> to vector<1xf32>
      %60 = vector.shape_cast %59 : vector<1xf32> to vector<1x1xf32>
      %61 = vector.broadcast %60 : vector<1x1xf32> to vector<1x2xf32>
      %62 = arith.divf %58, %61 : vector<1x2xf32>
      %c0_36 = arith.constant 0 : index
      %c0_37 = arith.constant 0 : index
      %c0_38 = arith.constant 0 : index
      %63 = vector.load %arg9[%c0_36, %c0_37, %c0_38] : memref<1x1x2xf32, #tpu.memory_space<vmem>>, vector<1x1x2xf32>
      %64 = vector.shape_cast %63 : vector<1x1x2xf32> to vector<1x2xf32>
      %65 = vector.shape_cast %62 : vector<1x2xf32> to vector<1x1x2xf32>
      tpu.vector_store %arg9[%c0_36, %c0_37, %c0_38], %65 {strides = array<i32>} : memref<1x1x2xf32, #tpu.memory_space<vmem>>, vector<1x1x2xf32>,
    } else {
    }
    return
  }
  func.func @transform_0(%arg0: i32, %arg1: i32) -> (i32, i32, i32) {
    %c0_i32 = arith.constant 0 : i32
    %c0_i32_0 = arith.constant 0 : i32
    return %arg0, %arg1, %c0_i32 : i32, i32, i32
  }
  func.func @transform_1(%arg0: i32, %arg1: i32) -> (i32, i32) {
    %c0_i32 = arith.constant 0 : i32
    %c0_i32_0 = arith.constant 0 : i32
    %c0_i32_1 = arith.constant 0 : i32
    return %c0_i32, %c0_i32_0 : i32, i32
  }
  func.func @transform_2(%arg0: i32, %arg1: i32) -> (i32, i32) {
    %c0_i32 = arith.constant 0 : i32
    %c0_i32_0 = arith.constant 0 : i32
    %c0_i32_1 = arith.constant 0 : i32
    return %c0_i32, %c0_i32_0 : i32, i32
  }
  func.func @transform_3(%arg0: i32, %arg1: i32) -> (i32, i32) {
    %c0_i32 = arith.constant 0 : i32
    %c0_i32_0 = arith.constant 0 : i32
    %c0_i32_1 = arith.constant 0 : i32
    return %c0_i32, %c0_i32_0 : i32, i32
  }
  func.func @transform_4(%arg0: i32, %arg1: i32) -> (i32, i32) {
    %c0_i32 = arith.constant 0 : i32
    %c0_i32_0 = arith.constant 0 : i32
    %c0_i32_1 = arith.constant 0 : i32
    return %c0_i32, %c0_i32_0 : i32, i32
  }
  func.func @transform_5(%arg0: i32, %arg1: i32) -> (i32, i32) {
    %c0_i32 = arith.constant 0 : i32
    %c0_i32_0 = arith.constant 0 : i32
    %c0_i32_1 = arith.constant 0 : i32
    return %c0_i32, %c0_i32_0 : i32, i32
  }
  func.func @transform_6(%arg0: i32, %arg1: i32) -> (i32, i32) {
    %c0_i32 = arith.constant 0 : i32
    %c0_i32_0 = arith.constant 0 : i32
    %c0_i32_1 = arith.constant 0 : i32
    return %c0_i32, %c0_i32_0 : i32, i32
  }
  func.func @transform_7(%arg0: i32, %arg1: i32) -> (i32, i32, i32) {
    %c0_i32 = arith.constant 0 : i32
    %c0_i32_0 = arith.constant 0 : i32
    %c0_i32_1 = arith.constant 0 : i32
    return %arg0, %c0_i32, %c0_i32_0 : i32, i32, i32
  }
}

</mosaic_0001>

<bundles_post_ra>
// kernel: tpu_custom_call.1
= control target key start
LH: loop header
LB: loop body
LE: loop exit
PB: predicated region body
PF: predicated region fallthrough
CT: control target
= control target key end

     0   :  { %12 = vsyncpa [#allocation4], 0  ;;  %s2055_s0 = inlined_call_operand.vmem [shape: f32[2,16,32], index: 0, kind: input, shape index: {}]   ;;  %s2056_s1 = inlined_call_operand.vmem [shape: f32[1,32], index: 1, kind: input, shape index: {}]   ;;  %s2057_s2 = inlined_call_operand.vmem [shape: f32[1,32], index: 2, kind: input, shape index: {}]   ;;  %s2058_s3 = inlined_call_operand.vmem [shape: f32[32,8], index: 3, kind: input, shape index: {}]   ;;  %s2059_s4 = inlined_call_operand.vmem [shape: f32[1,8], index: 4, kind: input, shape index: {}]   ;;  %s2060_s5 = inlined_call_operand.vmem [shape: f32[8,2], index: 5, kind: input, shape index: {}]   ;;  %s2061_s6 = inlined_call_operand.vmem [shape: f32[1,2], index: 6, kind: input, shape index: {}]   ;;  %s2062_s7 = inlined_call_operand.hbm [shape: f32[2,1,2], index: 7, kind: output, shape index: {}]  }
   0x1   :  { %14 = vsyncpa [#allocation4 + $0x1], 0  ;;  %s1821_s24 = smov 0   ;;  %s1823_s25 = smov 0  }
   0x2   :  { %s1825_s26 = smov 0   ;;  %s1827_s27 = smov 0  }
   0x3   :  { %s1829_s28 = smov 0   ;;  %s1831_s29 = smov 0  }
   0x4 LB: > { %s1421_s30 = sadd.s32 4294967295, %s1775_s29   ;;  %s1422_s8 = sadd.s32 4294967294, %s1775_s29   ;;  %s1775_s29 = sphi %s1831_s29, %s20_s29   ;;  %s1771_s28 = sphi %s1829_s28, %s2069_s28   ;;  %s1767_s27 = sphi %s1827_s27, %s2068_s27   ;;  %s1763_s26 = sphi %s1825_s26, %s2067_s26   ;;  %s1759_s25 = sphi %s1823_s25, %s2066_s25   ;;  %s1755_s24 = sphi %s1821_s24, %s2065_s24  }
   0x5   : > { %s32_s9 = sadd.s32 1, %s1771_s28  ;;  %s193_s10 = sadd.s32 1, %s1763_s26 }
   0x6   : > { %p34_p0 = scmp.ge.s32.totalorder %s32_s9, 2  ;;  %p203_p1 = scmp.ne.s32.totalorder %s1763_s26, %s1759_s25 }
   0x7   : > { %p204_p2 = scmp.eq.s32.totalorder %s1421_s30, 1  ;;  %p209_p3 = scmp.ne.s32.totalorder %s1759_s25, %s1755_s24 }
   0x8   : > { %s2071_s9 = smov (%p34_p0, %s32_s9), 0  ;;  %p210_p5 = scmp.eq.s32.totalorder %s1422_s8, 1 }
   0x9   : > { %p1861_p4 = por %p204_p2, %p203_p1  ;;  %s190_s12 = ssub.s32 %s1771_s28, %s2071_s9 }
   0xa   : > { %p1425_p6 = scmp.ge.s32.totalorder %s1775_s29, 1  ;;  %p191_p7 = scmp.eq.s32.totalorder %s190_s12, 0 }
   0xb   : > { %p1868_p8 = por %p210_p5, %p209_p3  ;;  %p259_p9 = scmp.lt.s32.totalorder %s1775_s29, 3 }
   0xc   : > { %s1874_s14 = scalar_select %p191_p7, %s1763_s26, %s193_s10  }
   0xd   : > { %p260_p10 = pnand %p1425_p6, %p259_p9 }
   0xe   : > { %p295_p11 = scmp.lt.s32.totalorder (!%p260_p10), %s1767_s27, 1  ;;  %vm314_vm0 = vcmask (!%p260_p10), 261120   ;;  %vm308_vm1 = vcmask (!%p260_p10), 253952   ;;  %v1777_v14 = vmov (!%p260_p10), 0.0   ;;  %v376_v15 = vld [vmem:[%s2058_s3] sm:$0xff] (!%p260_p10)  ;;  %v377_v16 = vld [vmem:[%s2058_s3 + $0x8] sm:$0xff] (!%p260_p10) }
   0xf   : > { %263 = sbr.rel (%p260_p10) target bundleno = 1230 (0x4ce), region = 48  ;;  %309 = vst.msk [vmem:[#allocation2] sm:$0x1] (!%p260_p10), %vm308_vm1, %v1777_v14  ;;  %v385_v17 = vand.u32 (!%p260_p10), 4294901760, %v376_v15  ;;  %v388_v18 = vand.u32 (!%p260_p10), 4294901760, %v377_v16  ;;  %v378_v21 = vld [vmem:[%s2058_s3 + $0x10] sm:$0xff] (!%p260_p10) }
  0x10   : > { %v379_v22 = vld [vmem:[%s2058_s3 + $0x18] sm:$0xff] (!%p260_p10)  ;;  %v391_v25 = vand.u32 (!%p260_p10), 4294901760, %v378_v21  ;;  %v1778_v30 = vmov (!%p260_p10), 0.0|0.0   ;;  %vm1779_vm2 = vmmov (!%p260_p10), 0   ;;  %v1428_v55 = vld [vmem:[%s2056_s1] ss:$0 sm:$0xff] (!%p260_p10) }
  0x11   : > { %v1901_v19 = vsub.f32 (!%p260_p10), %v376_v15, %v385_v17  ;;  %v1903_v20 = vsub.f32 (!%p260_p10), %v377_v16, %v388_v18  ;;  %v394_v26 = vand.u32 (!%p260_p10), 4294901760, %v379_v22  ;;  %1578 = vmatprep.subr.bf16.mxu0 (!%p260_p10), %v1778_v30  ;;  %1572 = vmatprep.subr.bf16.mxu1 (!%p260_p10), %v1778_v30  ;;  %v1933_v43 = vpack.c.bf16 (!%p260_p10), %v388_v18, %v385_v17  ;;  %v1429_v59 = vld [vmem:[%s2057_s2] ss:$0 sm:$0xff] (!%p260_p10)  ;;  %s292_s8 = sand.u32 (!%p260_p10), 1, %s1759_s25   ;;  %s1430_s10 = sshll.u32 (!%p260_p10), %s1767_s27, 4 }
  0x12   : > { %v1915_v29 = vsub.f32 (!%p260_p10), %v378_v21, %v391_v25  ;;  %1495 = vmatprep.mubr.msk.f32.mxu0 (!%p260_p10), %vm1779_vm2, %v1777_v14  ;;  %1484 = vmatprep.mubr.msk.f32.mxu1 (!%p260_p10), %vm1779_vm2, %v1777_v14  ;;  %vm876_vm3 = vcmask (!%p260_p10), 64512   ;;  %vm1326_vm4 = vcmask (!%p260_p10), 8192   ;;  %s293_s12 = scalar_lea.vmem (!%p260_p10), [#allocation3], %s292_s8  ;;  %s2007_s18 = scalar_lea.hbm (!%p260_p10), %s2062_s7, %s1430_s10 }
  0x13   : > { %v466_v23 = vand.u32 (!%p260_p10), 4294901760, %v1901_v19  ;;  %v473_v24 = vand.u32 (!%p260_p10), 4294901760, %v1903_v20  ;;  %v1918_v31 = vsub.f32 (!%p260_p10), %v379_v22, %v394_v26  ;;  %v1585_v42 = vpack.c.bf16 (!%p260_p10), %v1903_v20, %v1901_v19  ;;  %1574 = vmatpush3.bf16.msra.mxu1 (!%p260_p10), %v1933_v43 }
  0x14   : > { %v480_v34 = vand.u32 (!%p260_p10), 4294901760, %v1915_v29  ;;  %1575 = vmatprep.subr.bf16.mxu1 (!%p260_p10), %v1778_v30  ;;  %v1939_v45 = vpack.c.bf16 (!%p260_p10), %v394_v26, %v391_v25 }
  0x15   : > { %v467_v27 = vsub.f32 (!%p260_p10), %v1901_v19, %v466_v23  ;;  %v474_v28 = vsub.f32 (!%p260_p10), %v1903_v20, %v473_v24  ;;  %v487_v35 = vand.u32 (!%p260_p10), 4294901760, %v1918_v31  ;;  %v1588_v44 = vpack.c.bf16 (!%p260_p10), %v1918_v31, %v1915_v29  ;;  %v874_v20 = vld [vmem:[%s2060_s5] sm:$0xff] (!%p260_p10) }
  0x16   : > { %s296_s15 = scalar_select %p295_p11, %s1767_s27, 1  ;;  %v481_v37 = vsub.f32 %v1915_v29, %v480_v34  ;;  %v1597_v46 = vpack.c.bf16 %v473_v24, %v466_v23  ;;  %v881_v21 = vand.u32 4294901760, %v874_v20  ;;  %v380_v24 = vld [vmem:[%s2059_s4] sm:$0x1] }
  0x17   : > { %v468_v32 = vand.u32 4294901760, %v467_v27  ;;  %v475_v33 = vand.u32 4294901760, %v474_v28  ;;  %v488_v38 = vsub.f32 %v1918_v31, %v487_v35  ;;  %1577 = vmatpush3.bf16.msra.mxu1 %v1939_v45  ;;  %v1600_v47 = vpack.c.bf16 %v487_v35, %v480_v34  ;;  %s1780_s27 = smov [#allocation3]  }
  0x18   : > { %s1433_s16 = sshll.u32 %s296_s15, 4  ;;  %v482_v39 = vand.u32 4294901760, %v481_v37  ;;  %1542 = vmatprep.subr.mxu1 %v1777_v14  ;;  %s1352_s15 = sshll.u32 %s293_s12, 4  ;;  %s2009_s15 = int_to_ptr.vmem [resolvable:$true] %s1352_s15 }
  0x19   : > { %s302_s19 = scalar_lea.vmem %s2055_s0, %s1433_s16  ;;  %v1579_v36 = vpack.c.bf16 %v475_v33, %v468_v32  ;;  %v489_v40 = vand.u32 4294901760, %v488_v38  ;;  %v958_v33 = vsub.f32 %v874_v20, %v881_v21  ;;  %s1697_s20 = scalar_lea.vmem %s2009_s15, 16 }
  0x1a   : > { %v310_v0 = vld [vmem:[%s302_s19] sm:$0xff]  ;;  %v311_v1 = vld [vmem:[%s302_s19 + $0x8] sm:$0xff]  ;;  %s1340_s19 = scalar_lea.sflag [#allocation4], %s292_s8  ;;  %p1698_p12 = scmp.ne.s32.totalorder %s2009_s15, %s1697_s20 }
  0x1b   : > { %v315_v2 = vsel %vm314_vm0, %v310_v0, 0.0  ;;  %v318_v3 = vsel %vm314_vm0, %v311_v1, 0.0  ;;  %1580 = vmatpush3.bf16.msra.mxu0 %v1579_v36  ;;  %v1582_v41 = vpack.c.bf16 %v489_v40, %v482_v39  ;;  %v959_v36 = vand.u32 4294901760, %v958_v33  ;;  %s1701_s21 = sshll.u32 %s1780_s27, 4  ;;  %s1702_s21 = int_to_ptr.vmem [resolvable:$false] %s1701_s21 }
  0x1c   : > { %316 = vadd.xlane.f32.xlu0 %v315_v2  ;;  %1581 = vmatprep.subr.bf16.mxu0 %v1778_v30  ;;  %p1699_p13 = pnand %p1698_p12, %p1861_p4  ;;  %s1703_s22 = scalar_lea.vmem %s1702_s21, 32 }
  0x1d   : > { %v960_v39 = vsub.f32 %v958_v33, %v959_v36  ;;  %p1704_p1 = scmp.lt.s32.totalorder %s2009_s15, %s1702_s21  ;;  %p1705_p2 = scmp.lt.s32.totalorder %s1703_s22, %s1697_s20 }
  0x1e   : > { %p1700_p0 = pneg %p1699_p13 }
  0x1f   : > { %1583 = vmatpush3.bf16.msra.mxu0 %v1582_v41  ;;  %p1706_p3 = por %p1705_p2, %p1704_p1 }
  0x20   : > { %319 = vadd.xlane.f32.xlu0 %v318_v3  ;;  %1584 = vmatprep.subr.bf16.mxu0 %v1778_v30 }
  0x21   : > { %p1707_p5 = pnand %p1706_p3, %p1700_p0 }
  0xa9   : > { %v317_v4 = vpop.xlane.xlu0 %316 }
  0xaa   : > { %v322_v5 = vmul.f32 0.03125, %v317_v4 }
  0xac   : > { %v1883_v6 = vsub.f32 %v310_v0, %v322_v5 }
  0xad   : > { %v320_v7 = vpop.xlane.xlu0 %319 }
  0xae   : > { %v323_v8 = vmul.f32 0.03125, %v320_v7  ;;  %v326_v9 = vmul.f32 %v1883_v6, %v1883_v6 }
  0xb0   : > { %v1887_v10 = vsub.f32 %v311_v1, %v323_v8  ;;  %v328_v11 = vsel %vm314_vm0, %v326_v9, 0.0  ;;  %v358_v8 = vld [vmem:[#allocation2] sm:$0x1] }
  0xb1   : > { %329 = vadd.xlane.f32.xlu1 %v328_v11 }
  0xb2   : > { %v327_v12 = vmul.f32 %v1887_v10, %v1887_v10 }
  0xb4   : > { %v331_v13 = vsel %vm314_vm0, %v327_v12, 0.0 }
  0xb5   : > { %332 = vadd.xlane.f32.xlu1 %v331_v13 }
 0x13e   : > { %v330_v48 = vpop.xlane.xlu1 %329 }
 0x13f   : > { %v334_v49 = vmul.f32 0.03125, %v330_v48 }
 0x141   : > { %v336_v50 = vadd.f32 1e-05, %v334_v49 }
 0x142   : > { %v333_v51 = vpop.xlane.xlu1 %332 }
 0x143   : > { %1687 = vrsqrt.f32 %v336_v50  ;;  %v335_v52 = vmul.f32 0.03125, %v333_v51 }
 0x145   : > { %v337_v53 = vadd.f32 1e-05, %v335_v52 }
 0x147   : > { %1689 = vrsqrt.f32 %v337_v53 }
 0x14d   : > { %v1688_v54 = vpop.eup %1687 }
 0x14e   : > { %v340_v56 = vmul.f32 %v1688_v54, %v1883_v6 }
 0x150   : > { %v348_v57 = vmul.f32 %v1428_v55, %v340_v56 }
 0x151   : > { %v1690_v58 = vpop.eup %1689 }
 0x152   : > { %v341_v60 = vmul.f32 %v1690_v58, %v1887_v10  ;;  %v356_v61 = vadd.f32 %v1429_v59, %v348_v57 }
 0x154   : > { %v349_v62 = vmul.f32 %v1428_v55, %v341_v60  ;;  %v359_v0 = vsel %vm314_vm0, %v356_v61, 0.0 }
 0x156   : > { %v357_v63 = vadd.f32 %v1429_v59, %v349_v62 }
 0x158   : > { %v360_v1 = vsel %vm314_vm0, %v357_v63, 0.0 }
 0x159   : > { %v361_v2 = vadd.f32 %v360_v1, %v359_v0 }
 0x15b   : > { %v362_v3 = vrot.slane %v361_v2, 4 }
 0x15d   : > { %v363_v4 = vadd.f32 %v362_v3, %v361_v2 }
 0x15f   : > { %v364_v5 = vrot.slane %v363_v4, 2 }
 0x161   : > { %v365_v6 = vadd.f32 %v364_v5, %v363_v4 }
 0x163   : > { %v366_v7 = vrot.slane %v365_v6, 1 }
 0x165   : > { %v367_v9 = vadd.f32 %v366_v7, %v365_v6 }
 0x167   : > { %v368_v11 = vadd.f32 %v367_v9, %v358_v8 }
 0x169   : > { %370 = vst.msk [vmem:[#allocation2] sm:$0x1] %vm308_vm1, %v368_v11 }
 0x170   : > { %v374_v12 = vld [vmem:[#allocation2] sm:$0x1] }
 0x171   : > { %v375_v10 = vmul.f32 0.0625, %v374_v12 }
 0x173   : > { %v382_v13 = vsel %vm314_vm0, %v375_v10, 0 }
 0x174   : > { %v453_v15 = vand.u32 4294901760, %v382_v13 }
 0x176   : > { %1496 = vmatmul.mubr.f32.vlgmr.msra.gmra.mrb[0].mxu0 %v453_v15  ;;  %v454_v16 = vsub.f32 %v382_v13, %v453_v15 }
 0x177   : > { %1586 = vmatpush3.bf16.msra.mxu0 %v1585_v42  ;;  %1506 = vmatprep.mubr.msk.f32.mxu0 %vm1779_vm2, %v1777_v14  ;;  %v961_v42 = vand.u32 4294901760, %v960_v39 }
 0x178   : > { %1587 = vmatprep.subr.bf16.mxu0 %v1778_v30  ;;  %v455_v17 = vand.u32 4294901760, %v454_v16 }
 0x17a   : > { %v456_v18 = vsub.f32 %v454_v16, %v455_v17 }
 0x17b   : > { %1589 = vmatpush3.bf16.msra.mxu0 %v1588_v44  ;;  %v875_v44 = vld [vmem:[%s2061_s6] sm:$0x1] }
 0x17c   : > { %1590 = vmatprep.subr.bf16.mxu0 %v1778_v30  ;;  %v457_v19 = vand.u32 4294901760, %v456_v18 }
 0x17e   : > { %1485 = vmatmul.mubr.f32.vlgmr.msra.gmra.mrb[0].mxu1 %v457_v19  ;;  %1507 = vmatmul.mubr.f32.vlgmr.msra.gmra.mrb[0].mxu0 %v454_v16 }
 0x17f   : > { %1592 = vmatpush3.bf16.msra.mxu0 %v1933_v43  ;;  %1517 = vmatprep.mubr.msk.f32.mxu0 %vm1779_vm2, %v1777_v14 }
 0x180   : > { %1593 = vmatprep.subr.bf16.mxu0 %v1778_v30  ;;  %1544 = vmatprep.mubr.msk.f32.mxu1 %vm1779_vm2, %v1777_v14 }
 0x181   : > { %1543 = vmatpush3.msra.mxu1 %v881_v21 }
 0x182   : > { %1547 = vmatprep.subr.mxu1 %v1777_v14 }
 0x183   : > { %1595 = vmatpush3.bf16.msra.mxu0 %v1939_v45 }
 0x184   : > { %1596 = vmatprep.subr.bf16.mxu0 %v1778_v30 }
 0x186   : > { %1518 = vmatmul.mubr.f32.vlgmr.msra.gmra.mrb[0].mxu0 %v455_v17 }
 0x187   : > { %1598 = vmatpush3.bf16.msra.mxu0 %v1597_v46  ;;  %1528 = vmatprep.mubr.msk.f32.mxu0 %vm1779_vm2, %v1777_v14 }
 0x188   : > { %1599 = vmatprep.subr.bf16.mxu0 %v1778_v30 }
 0x18b   : > { %1601 = vmatpush3.bf16.msra.mxu0 %v1600_v47 }
 0x18c   : > { %1602 = vmatprep.subr.bf16.mxu0 %v1778_v30 }
 0x18e   : > { %1529 = vmatmul.mubr.f32.vlgmr.msra.gmra.mrb[0].mxu0 %v453_v15 }
 0x18f   : > { %1604 = vmatpush3.bf16.msra.mxu0 %v1933_v43  ;;  %1539 = vmatprep.mubr.msk.f32.mxu0 %vm1779_vm2, %v1777_v14 }
 0x190   : > { %1605 = vmatprep.subr.bf16.mxu0 %v1778_v30 }
 0x193   : > { %1607 = vmatpush3.bf16.msra.mxu0 %v1939_v45 }
 0x196   : > { %1540 = vmatmul.mubr.f32.vlgmr.msra.gmra.mrb[0].mxu0 %v453_v15 }
 0x251   : > { %v459_v22 = vpop.f32.mrb[0].mxu1 }
 0x252   : > { %v1486_v23 = vpop.f32.mrb[1].mxu1  ;;  %v460_v25 = vadd.f32 %v459_v22, %v380_v24 }
 0x269   : > { %v865_v26 = vpop.f32.mrb[0].mxu0 }
 0x26a   : > { %v1609_v27 = vadd.f32 %v865_v26, %v460_v25  ;;  %v1541_v28 = vpop.f32.mrb[1].mxu0 }
 0x26c   : > { %v870_v29 = vmul.f32 0.70710677, %v1609_v27  ;;  %v869_v31 = vmul.f32 0.5, %v1609_v27 }
 0x26e   : > { %1691 = verf.f32 %v870_v29 }
 0x278   : > { %v1692_v30 = vpop.eup %1691 }
 0x279   : > { %v872_v32 = vadd.f32 1.0, %v1692_v30 }
 0x27b   : > { %v873_v34 = vmul.f32 %v872_v32, %v869_v31 }
 0x27d   : > { %v878_v35 = vsel %vm876_vm3, %v873_v34, 0 }
 0x27e   : > { %v946_v37 = vand.u32 4294901760, %v878_v35 }
 0x280   : > { %v947_v38 = vsub.f32 %v878_v35, %v946_v37 }
 0x282   : > { %v948_v40 = vand.u32 4294901760, %v947_v38 }
 0x284   : > { %v949_v41 = vsub.f32 %v947_v38, %v948_v40 }
 0x286   : > { %v950_v43 = vand.u32 4294901760, %v949_v41 }
 0x288   : > { %1545 = vmatmul.mubr.f32.vlgmr.msra.gmra.mrb[2].mxu1 %v950_v43 }
 0x289   : > { %1548 = vmatpush3.msra.mxu1 %v961_v42  ;;  %1549 = vmatprep.mubr.msk.f32.mxu1 %vm1779_vm2, %v1777_v14 }
 0x28a   : > { %1552 = vmatprep.subr.mxu1 %v1777_v14 }
 0x290   : > { %1550 = vmatmul.mubr.f32.vlgmr.msra.gmra.mrb[2].mxu1 %v946_v37 }
 0x291   : > { %1553 = vmatpush3.msra.mxu1 %v958_v33  ;;  %1554 = vmatprep.mubr.msk.f32.mxu1 %vm1779_vm2, %v1777_v14 }
 0x292   : > { %1557 = vmatprep.subr.mxu1 %v1777_v14 }
 0x298   : > { %1555 = vmatmul.mubr.f32.vlgmr.msra.gmra.mrb[2].mxu1 %v947_v38 }
 0x299   : > { %1558 = vmatpush3.msra.mxu1 %v881_v21  ;;  %1559 = vmatprep.mubr.msk.f32.mxu1 %vm1779_vm2, %v1777_v14 }
 0x29a   : > { %1562 = vmatprep.subr.mxu1 %v1777_v14 }
 0x2a0   : > { %1560 = vmatmul.mubr.f32.vlgmr.msra.gmra.mrb[2].mxu1 %v948_v40 }
 0x2a1   : > { %1563 = vmatpush3.msra.mxu1 %v959_v36  ;;  %1564 = vmatprep.mubr.msk.f32.mxu1 %vm1779_vm2, %v1777_v14 }
 0x2a2   : > { %1567 = vmatprep.subr.mxu1 %v1777_v14 }
 0x2a8   : > { %1565 = vmatmul.mubr.f32.vlgmr.msra.gmra.mrb[2].mxu1 %v946_v37 }
 0x2a9   : > { %1568 = vmatpush3.msra.mxu1 %v881_v21  ;;  %1569 = vmatprep.mubr.msk.f32.mxu1 %vm1779_vm2, %v1777_v14 }
 0x2b0   : > { %1570 = vmatmul.mubr.f32.vlgmr.msra.gmra.mrb[2].mxu1 %v946_v37 }
 0x383   : > { %v1322_v45 = vpop.f32.mrb[2].mxu1 }
 0x384   : > { %v1610_v46 = vadd.f32 %v1322_v45, %v875_v44  ;;  %v1571_v47 = vpop.f32.mrb[3].mxu1 }
 0x386   : > { %v1327_v48 = vsel %vm1326_vm4, %v1610_v46, -inf }
 0x387   : > { %1328 = vmax.xlane.f32.xlu0 %v1327_v48 }
 0x414   : > { %v1329_v49 = vpop.xlane.xlu0 %1328 }
 0x415   : > { %v1330_v50 = vsub.f32 %v1610_v46, %v1329_v49 }
 0x417   : > { %v1331_v51 = vmul.f32 1.442695, %v1330_v50 }
 0x419   : > { %1693 = vpow2.f32 %v1331_v51 }
 0x423   : > { %v1694_v52 = vpop.eup %1693 }
 0x424   : > { %v1333_v14 = vsel %vm1326_vm4, %v1694_v52, 0.0 }
 0x425   : > { %1334 = vadd.xlane.f32.xlu1 %v1333_v14 }
 0x4b2   : > { %v1335_v53 = vpop.xlane.xlu1 %1334 }
 0x4b3   : > { %1695 = vrcp.f32 %v1335_v53 }
 0x4bd   : > { %v1696_v54 = vpop.eup %1695 }
 0x4be   : > { %v1337_v55 = vmul.f32 %v1696_v54, %v1694_v52 }
 0x4c0   : > { %1338 = vst.msk [vmem:[%s293_s12] sm:$0x1] %vm1326_vm4, %v1337_v55 }
 0x4c1   : > { %1710 = shalt.err (!%p1707_p5)
}
 0x4c2   : > { %s1711_s23 = scalar_lea.hbm %s2007_s18, 16  ;;  %s1715_s10 = scalar_lea.hbm %s2062_s7, 32 }
 0x4c3   : > { %p1712_p6 = scmp.ne.s32.totalorder %s2007_s18, %s1711_s23  ;;  %p1716_p10 = scmp.lt.u32.totalorder %s2007_s18, %s2062_s7 }
 0x4c4   : > { %p1717_p11 = scmp.lt.u32.totalorder %s1715_s10, %s1711_s23  ;;  %p1719_p13 = scmp.lt.u32.totalorder %s1711_s23, %s2007_s18 }
 0x4c5   : > { %p1713_p7 = pnand %p1712_p6, %p1861_p4 }
 0x4c6   : > { %p1718_p12 = por %p1717_p11, %p1716_p10 }
 0x4c7   : > { %p1714_p9 = pneg %p1713_p7 }
 0x4c8   : > { %p1720_p0 = por %p1719_p13, %p1718_p12 }
 0x4ca   : > { %p1721_p1 = pnand %p1720_p0, %p1714_p9 }
 0x4cc   : > { %1724 = shalt.err (!%p1721_p1)
}
 0x4cd   : > { %1629 = dma.vmem_to_hbm [thread:$0]  (%p1861_p4), %s2009_s15, 16, %s2007_s18, %s1340_s19  }
 0x4ce PF: > { %p1635_p2 = scmp.ge.s32.totalorder %s1775_s29, 2  ;;  %s1364_s17 = sand.u32 1, %s1755_s24  }
 0x4cf   : > { %s1365_s20 = scalar_lea.sflag [#allocation4], %s1364_s17 }
 0x4d0   : > { %p1632_p3 = pnand %p1635_p2, %p1868_p8 }
 0x4d2   : > { %1750 = dma.done.wait (!%p1632_p3), %s1365_s20, 16  }
 0x4d3   : > { %1752 = vsyncadd (!%p1632_p3), %s1365_s20, 4294967280  ;;  %s20_s29 = sadd.s32 1, %s1775_s29   ;;  %s2065_s24 = smov %s1759_s25 }
 0x4d4   : > { %p17_p5 = scmp.ge.s32.totalorder %s20_s29, 4   ;;  %s2066_s25 = smov %s1763_s26 }
 0x4d5   : > { %s2067_s26 = smov %s1874_s14  ;;  %s2068_s27 = smov %s1771_s28 }
 0x4d6   : > { %s2069_s28 = smov %s2071_s9  ;;  %19 = sbr.rel (!%p17_p5) target bundleno = 4 (0x4), region = 91 }
 0x4dd   :  { %1369 = vsyncpa [#allocation4], 1 }
 0x4de   :  { %1371 = vsyncpa [#allocation4 + $0x1], 1 }

</bundles_post_ra>
